<compile_context>
chip_gen: v7x
topology: tpu7x:2x2x1
jax: 0.10.0
libtpu: 0.0.40
codegen_flags: <defaults>
</compile_context>

<pallas_src>
import functools
from typing import NamedTuple, Optional

import jax
import jax.numpy as jnp
from jax import lax
from jax.experimental import pallas as pl
from jax.experimental.pallas import tpu as pltpu


def _round_up(x, m):
    return (x + m - 1) // m * m


# ----------------------------------------------------------------------------
# Hardware feature detection (done once, outside jit).
# ----------------------------------------------------------------------------
_FEATURE_CACHE = {}


def _device_kind():
    try:
        return jax.devices()[0].device_kind.lower()
    except Exception:  # pragma: no cover
        return ""


def _vmem_limit_bytes():
    if "vmem" not in _FEATURE_CACHE:
        kind = _device_kind()
        if "v5" in kind or "v6" in kind:
            # 128 MiB physical VMEM per TensorCore.
            _FEATURE_CACHE["vmem"] = 96 * 1024 * 1024
        else:
            # v7x: 64 MiB per TensorCore -> leave headroom for Mosaic scratch.
            _FEATURE_CACHE["vmem"] = 40 * 1024 * 1024
    return _FEATURE_CACHE["vmem"]


def _int8_probe_kernel(a_ref, b_ref, o_ref):
    o_ref[...] = lax.dot_general(
        a_ref[...], b_ref[...],
        dimension_numbers=(((1,), (0,)), ((), ())),
        preferred_element_type=jnp.int32,
    )


def _int8_mxu_supported():
    """True when the chip has an integer MXU path and Pallas can lower to it."""
    if "int8" in _FEATURE_CACHE:
        return _FEATURE_CACHE["int8"]
    kind = _device_kind()
    ok = ("v5" in kind) or ("v6" in kind)   # v7x has no integer MXU
    if ok:
        try:
            a = jnp.ones((32, 128), jnp.int8)
            b = jnp.ones((128, 128), jnp.int8)
            out = pl.pallas_call(
                _int8_probe_kernel,
                out_shape=jax.ShapeDtypeStruct((32, 128), jnp.int32),
            )(a, b)
            out = jax.block_until_ready(out)
            ok = bool(out[0, 0] == 128)
        except Exception:
            ok = False
    _FEATURE_CACHE["int8"] = ok
    return ok


# ----------------------------------------------------------------------------
# Kernel 1: dynamic per-token symmetric int8 activation quantization.
# ----------------------------------------------------------------------------
def _act_quant_kernel(x_ref, xq_ref, s_ref):
    """x_ref: (TMq, Kp) any float; xq_ref: (TMq, Kp) int8; s_ref: (TMq, 1) f32."""
    x = x_ref[...].astype(jnp.float32)
    amax = jnp.max(jnp.abs(x), axis=-1, keepdims=True)          # (TMq, 1)
    scale = amax * (1.0 / 127.0)                                 # (TMq, 1)
    # Per-row reciprocal so the hot (TMq, K) path is a multiply.
    inv = 1.0 / jnp.maximum(scale, 1e-12)                        # (TMq, 1)
    xq = jnp.clip(jnp.round(x * inv), -128.0, 127.0)
    xq_ref[...] = xq.astype(jnp.int8)
    s_ref[...] = scale


# ----------------------------------------------------------------------------
# Kernel 2: tiled int8 GEMM with fused dequant + bias epilogue.
#   Weight is pre-transposed to (K, N): w tile is (tk, tn), lane-dense N.
# ----------------------------------------------------------------------------
def _q8_gemm_kernel(xq_ref, w_ref, s_ref, ws_ref, b_ref, o_ref, acc_ref,
                    *, use_int8_mxu):
    """xq_ref : (TM, TK) int8   quantized activation tile
       w_ref  : (TK, TN) int8   weight tile (pre-transposed, stays int8)
       s_ref  : (TM, 1)  f32    per-token activation scale
       ws_ref : (1, TN)  f32    per-out-channel weight scale
       b_ref  : (1, TN)  f32    bias (zeros when the module has no bias)
       o_ref  : (TM, TN) bf16   output tile
       acc_ref: (TM, TN) i32/f32 VMEM accumulator (resident across the K axis)
    """
    k = pl.program_id(2)

    @pl.when(k == 0)
    def _():
        acc_ref[...] = jnp.zeros_like(acc_ref)

    if use_int8_mxu:
        # Native int8 x int8 -> int32 MXU path (v5e / v6e): no per-step
        # widening, bit-exact accumulation.
        acc_ref[...] += lax.dot_general(
            xq_ref[...], w_ref[...],
            dimension_numbers=(((1,), (0,)), ((), ())),
            preferred_element_type=jnp.int32,
        )
    else:
        # v7x (no integer MXU): widen int8 -> bf16 in-register per tile;
        # int8 values are exact in bf16, accumulate in f32.
        acc_ref[...] += lax.dot_general(
            xq_ref[...].astype(jnp.bfloat16), w_ref[...].astype(jnp.bfloat16),
            dimension_numbers=(((1,), (0,)), ((), ())),
            preferred_element_type=jnp.float32,
        )

    @pl.when(k == pl.num_programs(2) - 1)
    def _():
        out = acc_ref[...].astype(jnp.float32) * s_ref[...] * ws_ref[...] \
            + b_ref[...]
        o_ref[...] = out.astype(jnp.bfloat16)


# ----------------------------------------------------------------------------
# One-time weight preparation (transpose + pad + cast scales/bias).
# ----------------------------------------------------------------------------
class PreparedWeight(NamedTuple):
    w_kn: jnp.ndarray        # (Kp, Np) int8, pre-transposed & padded
    w_scale: jnp.ndarray     # (1, Np)  f32
    bias: jnp.ndarray        # (1, Np)  f32 (zeros if module has no bias)
    out_features: int
    in_features: int
    tn: int                  # N tile (divides Np)
    tk: int                  # K tile (divides Kp)


def prepare_weight_int8(weight_int8, weight_scale, bias=None,
                        *, tile_n=512, tile_k=1024) -> PreparedWeight:
    """Call once per weight (outside the hot forward path)."""
    N, K = weight_int8.shape
    tn = min(tile_n, _round_up(N, 128))
    tk = min(tile_k, _round_up(K, 128))
    Np, Kp = _round_up(N, tn), _round_up(K, tk)

    w_kn = jnp.pad(jnp.transpose(weight_int8), ((0, Kp - K), (0, Np - N)))
    ws = jnp.pad(jnp.reshape(weight_scale, (1, N)).astype(jnp.float32),
                 ((0, 0), (0, Np - N)))
    if bias is None:
        b = jnp.zeros((1, Np), jnp.float32)
    else:
        b = jnp.pad(jnp.reshape(bias, (1, N)).astype(jnp.float32),
                    ((0, 0), (0, Np - N)))
    return PreparedWeight(jnp.asarray(w_kn, jnp.int8), ws, b, N, K, tn, tk)


# ----------------------------------------------------------------------------
# Jitted forward on the flattened (M, K) activation.
# ----------------------------------------------------------------------------
@functools.partial(
    jax.jit,
    static_argnames=("out_features", "tm", "tn", "tk", "tm_q",
                     "use_int8_mxu", "vmem_limit_bytes"))
def _forward_2d(x2d, w_kn, w_scale, bias, *, out_features, tm, tn, tk, tm_q,
                use_int8_mxu, vmem_limit_bytes):
    M, K = x2d.shape
    Kp, Np = w_kn.shape
    Mp = _round_up(M, tm)

    # Pad the activation in its NATIVE dtype (no f32 HBM copy).
    x_pad = x2d
    if Mp != M or Kp != K:
        x_pad = jnp.pad(x2d, ((0, Mp - M), (0, Kp - K)))

    # --- pass 1: per-token quantization (full K per tile -> exact amax) ----
    xq, act_scale = pl.pallas_call(
        _act_quant_kernel,
        out_shape=(jax.ShapeDtypeStruct((Mp, Kp), jnp.int8),
                   jax.ShapeDtypeStruct((Mp, 1), jnp.float32)),
        grid_spec=pltpu.PrefetchScalarGridSpec(
            num_scalar_prefetch=0,
            grid=(Mp // tm_q,),
            in_specs=[pl.BlockSpec((tm_q, Kp), lambda i: (i, 0))],
            out_specs=(pl.BlockSpec((tm_q, Kp), lambda i: (i, 0)),
                       pl.BlockSpec((tm_q, 1), lambda i: (i, 0))),
        ),
        compiler_params=pltpu.CompilerParams(
            dimension_semantics=("parallel",),
            vmem_limit_bytes=vmem_limit_bytes,
        ),
    )(x_pad)

    # --- pass 2: tiled int8 GEMM + dequant + bias -> bf16 -------------------
    gemm = functools.partial(_q8_gemm_kernel, use_int8_mxu=use_int8_mxu)
    acc_dtype = jnp.int32 if use_int8_mxu else jnp.float32
    out_p = pl.pallas_call(
        gemm,
        out_shape=jax.ShapeDtypeStruct((Mp, Np), jnp.bfloat16),
        grid_spec=pltpu.PrefetchScalarGridSpec(
            num_scalar_prefetch=0,
            grid=(Mp // tm, Np // tn, Kp // tk),
            in_specs=[
                pl.BlockSpec((tm, tk), lambda i, j, k: (i, k)),   # x_q
                pl.BlockSpec((tk, tn), lambda i, j, k: (k, j)),   # weight (K,N)
                pl.BlockSpec((tm, 1), lambda i, j, k: (i, 0)),    # act scale
                pl.BlockSpec((1, tn), lambda i, j, k: (0, j)),    # weight scale
                pl.BlockSpec((1, tn), lambda i, j, k: (0, j)),    # bias
            ],
            out_specs=pl.BlockSpec((tm, tn), lambda i, j, k: (i, j)),
            scratch_shapes=[pltpu.VMEM((tm, tn), acc_dtype)],
        ),
        compiler_params=pltpu.CompilerParams(
            dimension_semantics=("parallel", "parallel", "arbitrary"),
            vmem_limit_bytes=vmem_limit_bytes,
        ),
    )(xq, w_kn, act_scale, w_scale, bias)

    return out_p[:M, :out_features]


# ----------------------------------------------------------------------------
# Public wrapper
# ----------------------------------------------------------------------------
def quant_linear_int8(x, prepared: PreparedWeight,
                      *, tile_m=256, tile_m_quant=128):
    """x: (..., in_features); returns (..., out_features) bfloat16."""
    K = prepared.in_features
    N = prepared.out_features
    orig_shape = x.shape
    x2d = x.reshape(-1, K)                 # keep native dtype (bf16/f32/...)
    M = x2d.shape[0]

    Kp, _ = prepared.w_kn.shape
    tm = min(tile_m, _round_up(M, 32))
    tn, tk = prepared.tn, prepared.tk

    use_int8 = _int8_mxu_supported()
    vmem_limit = _vmem_limit_bytes()

    # Quant-pass M-tile: smaller than the GEMM tm (it holds a full-K row in
    # f32), shrunk until its working set fits the generation-aware VMEM budget.
    x_bytes = jnp.dtype(x2d.dtype).itemsize
    per_row = Kp * (2 * x_bytes + 2 * 1 + 4)   # dbl-buf in, dbl-buf int8 out, f32 tmp
    budget = vmem_limit // 2
    tm_q = tm
    while tm_q > 32 and (tm_q > tile_m_quant or tm_q * per_row > budget):
        half = tm_q // 2
        if tm % half != 0 or half % 32 != 0:
            break
        tm_q = half

    out2d = _forward_2d(
        x2d, prepared.w_kn, prepared.w_scale, prepared.bias,
        out_features=N, tm=tm, tn=tn, tk=tk, tm_q=tm_q,
        use_int8_mxu=use_int8, vmem_limit_bytes=vmem_limit)
    return out2d.reshape(*orig_shape[:-1], N)


# ----------------------------------------------------------------------------
# Pure-JAX reference (mirrors the PyTorch module; exact int32 accumulation)
# ----------------------------------------------------------------------------
def _reference(x, weight_int8, weight_scale, bias):
    x2d = x.reshape(-1, x.shape[-1]).astype(jnp.float32)
    amax = jnp.max(jnp.abs(x2d), axis=-1, keepdims=True)
    scale = amax / 127.0
    xq = jnp.clip(jnp.round(x2d / jnp.maximum(scale, 1e-12)), -128, 127)
    acc = xq.astype(jnp.int32) @ weight_int8.astype(jnp.int32).T
    out = acc.astype(jnp.float32) * scale \
        * weight_scale.reshape(1, -1).astype(jnp.float32)
    if bias is not None:
        out = out + bias.reshape(1, -1).astype(jnp.float32)
    return out.astype(jnp.bfloat16).reshape(*x.shape[:-1], weight_int8.shape[0])


if __name__ == "__main__":
    key = jax.random.PRNGKey(0)

    def run_case(name, x, in_features, out_features, keys):
        kw, ks, kb = keys
        weight_int8 = jax.random.randint(
            kw, (out_features, in_features), -128, 128, dtype=jnp.int32
        ).astype(jnp.int8)
        weight_scale = (
            jax.random.uniform(ks, (out_features, 1), dtype=jnp.float32) * 0.02
            + 0.005)
        bias = jax.random.normal(kb, (out_features,), dtype=jnp.float32) * 0.1

        prepared = prepare_weight_int8(weight_int8, weight_scale, bias)
        out = quant_linear_int8(x, prepared)
        out = jax.block_until_ready(out)

        ref = _reference(x, weight_int8, weight_scale, bias)
        assert out.shape == (*x.shape[:-1], out_features), name
        assert out.dtype == jnp.bfloat16, name
        o = out.astype(jnp.float32)
        r = ref.astype(jnp.float32)
        err = float(jnp.max(jnp.abs(o - r)))
        tol = 2e-2 * (1.0 + float(jnp.max(jnp.abs(r))))
        assert err <= tol, f"{name}: max abs err {err} > tol {tol}"

    # Case 1: small shapes (batch=2, seq=8, in=32, out=32), f32 activations.
    k1, k2 = jax.random.split(key)
    kx, kw, ks, kb = jax.random.split(k1, 4)
    x_small = jax.random.normal(kx, (2, 8, 32), dtype=jnp.float32)
    run_case("small", x_small, 32, 32, (kw, ks, kb))

    # Case 2: exercises real tiling, padding of M/N/K and the multi-step K
    # accumulator (M=320, K=1600, N=1152; none divisible by the tiles),
    # with bf16 activations (native-dtype pass-1 path).
    kx, kw, ks, kb = jax.random.split(k2, 4)
    x_big = jax.random.normal(kx, (2, 160, 1600), dtype=jnp.float32)
    x_big = x_big.astype(jnp.bfloat16)
    run_case("tiled", x_big, 1600, 1152, (kw, ks, kb))

    print("KERNEL_OK")
</pallas_src>

<mosaic_0001>
module attributes {stable_mosaic.version = 11 : i64} {
  func.func @_act_quant_kernel(%arg0: i32, %arg1: memref<32x128xf32, #tpu.memory_space<vmem>>, %arg2: memref<32x128xi8, #tpu.memory_space<vmem>>, %arg3: memref<32x1xf32, #tpu.memory_space<vmem>>) attributes {dimension_semantics = [#tpu.dimension_semantics<parallel>], iteration_bounds = array<i64: 1>, scalar_prefetch = 0 : i64, scratch_operands = 0 : i64, tpu.core_type = #tpu.core_type<tc>, window_params = [{transform_indices = @transform_0, window_bounds = array<i64: 32, 128>}, {transform_indices = @transform_1, window_bounds = array<i64: 32, 128>}, {transform_indices = @transform_2, window_bounds = array<i64: 32, 1>}]} {
    %c0 = arith.constant 0 : index
    %c0_0 = arith.constant 0 : index
    %0 = vector.load %arg1[%c0, %c0_0] : memref<32x128xf32, #tpu.memory_space<vmem>>, vector<32x128xf32>
    %1 = math.absf %0 : vector<32x128xf32>
    %cst = arith.constant dense<0xFF800000> : vector<32xf32>
    %2 = vector.multi_reduction <maximumf>, %1, %cst [1] : vector<32x128xf32> to vector<32xf32>
    %3 = vector.shape_cast %2 : vector<32xf32> to vector<32x1xf32>
    %cst_1 = arith.constant 0.00787401571 : f32
    %4 = vector.broadcast %cst_1 : f32 to vector<32x1xf32>
    %5 = arith.mulf %3, %4 : vector<32x1xf32>
    %cst_2 = arith.constant 9.99999996E-13 : f32
    %6 = vector.broadcast %cst_2 : f32 to vector<32x1xf32>
    %7 = arith.maximumf %5, %6 : vector<32x1xf32>
    %cst_3 = arith.constant 1.000000e+00 : f32
    %8 = vector.broadcast %cst_3 : f32 to vector<32x1xf32>
    %9 = arith.divf %8, %7 : vector<32x1xf32>
    %10 = vector.broadcast %9 : vector<32x1xf32> to vector<32x128xf32>
    %11 = arith.mulf %0, %10 : vector<32x128xf32>
    %12 = math.roundeven %11 : vector<32x128xf32>
    %cst_4 = arith.constant -1.280000e+02 : f32
    %cst_5 = arith.constant 1.270000e+02 : f32
    %13 = vector.broadcast %cst_4 : f32 to vector<32x128xf32>
    %14 = arith.maximumf %13, %12 : vector<32x128xf32>
    %15 = vector.broadcast %cst_5 : f32 to vector<32x128xf32>
    %16 = arith.minimumf %15, %14 : vector<32x128xf32>
    %17 = arith.fptosi %16 : vector<32x128xf32> to vector<32x128xi8>
    %c0_6 = arith.constant 0 : index
    %c0_7 = arith.constant 0 : index
    %18 = vector.load %arg2[%c0_6, %c0_7] : memref<32x128xi8, #tpu.memory_space<vmem>>, vector<32x128xi8>
    tpu.vector_store %arg2[%c0_6, %c0_7], %17 {strides = array<i32>} : memref<32x128xi8, #tpu.memory_space<vmem>>, vector<32x128xi8>,
    %c0_8 = arith.constant 0 : index
    %c0_9 = arith.constant 0 : index
    %19 = vector.load %arg3[%c0_8, %c0_9] : memref<32x1xf32, #tpu.memory_space<vmem>>, vector<32x1xf32>
    tpu.vector_store %arg3[%c0_8, %c0_9], %5 {strides = array<i32>} : memref<32x1xf32, #tpu.memory_space<vmem>>, vector<32x1xf32>,
    return
  }
  func.func @transform_0(%arg0: i32) -> (i32, i32) {
    %c0_i32 = arith.constant 0 : i32
    %c0_i32_0 = arith.constant 0 : i32
    return %arg0, %c0_i32 : i32, i32
  }
  func.func @transform_1(%arg0: i32) -> (i32, i32) {
    %c0_i32 = arith.constant 0 : i32
    %c0_i32_0 = arith.constant 0 : i32
    return %arg0, %c0_i32 : i32, i32
  }
  func.func @transform_2(%arg0: i32) -> (i32, i32) {
    %c0_i32 = arith.constant 0 : i32
    %c0_i32_0 = arith.constant 0 : i32
    return %arg0, %c0_i32 : i32, i32
  }
}

module attributes {stable_mosaic.version = 11 : i64} {
  func.func @_q8_gemm_kernel(%arg0: i32, %arg1: i32, %arg2: i32, %arg3: memref<32x128xi8, #tpu.memory_space<vmem>>, %arg4: memref<128x128xi8, #tpu.memory_space<vmem>>, %arg5: memref<32x1xf32, #tpu.memory_space<vmem>>, %arg6: memref<1x128xf32, #tpu.memory_space<vmem>>, %arg7: memref<1x128xf32, #tpu.memory_space<vmem>>, %arg8: memref<32x128xbf16, #tpu.memory_space<vmem>>, %arg9: memref<32x128xf32, #tpu.memory_space<vmem>>) attributes {dimension_semantics = [#tpu.dimension_semantics<parallel>, #tpu.dimension_semantics<parallel>, #tpu.dimension_semantics<arbitrary>], iteration_bounds = array<i64: 1, 1, 1>, scalar_prefetch = 0 : i64, scratch_operands = 1 : i64, tpu.core_type = #tpu.core_type<tc>, window_params = [{transform_indices = @transform_0, window_bounds = array<i64: 32, 128>}, {transform_indices = @transform_1, window_bounds = array<i64: 128, 128>}, {transform_indices = @transform_2, window_bounds = array<i64: 32, 1>}, {transform_indices = @transform_3, window_bounds = array<i64: 1, 128>}, {transform_indices = @transform_4, window_bounds = array<i64: 1, 128>}, {transform_indices = @transform_5, window_bounds = array<i64: 32, 128>}]} {
    %c0_i32 = arith.constant 0 : i32
    %0 = arith.cmpi eq, %arg2, %c0_i32 : i32
    %1 = arith.extui %0 : i1 to i32
    %c0_i32_0 = arith.constant 0 : i32
    %2 = arith.cmpi ne, %1, %c0_i32_0 : i32
    scf.if %2 {
      %cst_10 = arith.constant 0.000000e+00 : f32
      %14 = vector.broadcast %cst_10 : f32 to vector<32x128xf32>
      %c0_11 = arith.constant 0 : index
      %c0_12 = arith.constant 0 : index
      %15 = vector.load %arg9[%c0_11, %c0_12] : memref<32x128xf32, #tpu.memory_space<vmem>>, vector<32x128xf32>
      tpu.vector_store %arg9[%c0_11, %c0_12], %14 {strides = array<i32>} : memref<32x128xf32, #tpu.memory_space<vmem>>, vector<32x128xf32>,
    } else {
    }
    %c0 = arith.constant 0 : index
    %c0_1 = arith.constant 0 : index
    %3 = vector.load %arg9[%c0, %c0_1] : memref<32x128xf32, #tpu.memory_space<vmem>>, vector<32x128xf32>
    %c0_2 = arith.constant 0 : index
    %c0_3 = arith.constant 0 : index
    %4 = vector.load %arg3[%c0_2, %c0_3] : memref<32x128xi8, #tpu.memory_space<vmem>>, vector<32x128xi8>
    %5 = arith.sitofp %4 : vector<32x128xi8> to vector<32x128xbf16>
    %c0_4 = arith.constant 0 : index
    %c0_5 = arith.constant 0 : index
    %6 = vector.load %arg4[%c0_4, %c0_5] : memref<128x128xi8, #tpu.memory_space<vmem>>, vector<128x128xi8>
    %7 = arith.sitofp %6 : vector<128x128xi8> to vector<128x128xbf16>
    %cst = arith.constant dense<0.000000e+00> : vector<32x128xf32>
    %8 = tpu.matmul %5, %7, %cst {dimension_numbers = #tpu.dot_dimension_numbers<[1], [0], [0], [1], [0, 0, 1, 1], [], []>} : vector<32x128xbf16>, vector<128x128xbf16>, vector<32x128xf32> -> vector<32x128xf32>
    %9 = arith.addf %3, %8 : vector<32x128xf32>
    %c0_6 = arith.constant 0 : index
    %c0_7 = arith.constant 0 : index
    %10 = vector.load %arg9[%c0_6, %c0_7] : memref<32x128xf32, #tpu.memory_space<vmem>>, vector<32x128xf32>
    tpu.vector_store %arg9[%c0_6, %c0_7], %9 {strides = array<i32>} : memref<32x128xf32, #tpu.memory_space<vmem>>, vector<32x128xf32>,
    %c0_i32_8 = arith.constant 0 : i32
    %11 = arith.cmpi eq, %arg2, %c0_i32_8 : i32
    %12 = arith.extui %11 : i1 to i32
    %c0_i32_9 = arith.constant 0 : i32
    %13 = arith.cmpi ne, %12, %c0_i32_9 : i32
    scf.if %13 {
      %c0_10 = arith.constant 0 : index
      %c0_11 = arith.constant 0 : index
      %14 = vector.load %arg9[%c0_10, %c0_11] : memref<32x128xf32, #tpu.memory_space<vmem>>, vector<32x128xf32>
      %c0_12 = arith.constant 0 : index
      %c0_13 = arith.constant 0 : index
      %15 = vector.load %arg5[%c0_12, %c0_13] : memref<32x1xf32, #tpu.memory_space<vmem>>, vector<32x1xf32>
      %16 = vector.broadcast %15 : vector<32x1xf32> to vector<32x128xf32>
      %17 = arith.mulf %14, %16 : vector<32x128xf32>
      %c0_14 = arith.constant 0 : index
      %c0_15 = arith.constant 0 : index
      %18 = vector.load %arg6[%c0_14, %c0_15] : memref<1x128xf32, #tpu.memory_space<vmem>>, vector<1x128xf32>
      %19 = vector.broadcast %18 : vector<1x128xf32> to vector<32x128xf32>
      %20 = arith.mulf %17, %19 : vector<32x128xf32>
      %c0_16 = arith.constant 0 : index
      %c0_17 = arith.constant 0 : index
      %21 = vector.load %arg7[%c0_16, %c0_17] : memref<1x128xf32, #tpu.memory_space<vmem>>, vector<1x128xf32>
      %22 = vector.broadcast %21 : vector<1x128xf32> to vector<32x128xf32>
      %23 = arith.addf %20, %22 : vector<32x128xf32>
      %24 = arith.truncf %23 : vector<32x128xf32> to vector<32x128xbf16>
      %c0_18 = arith.constant 0 : index
      %c0_19 = arith.constant 0 : index
      %25 = vector.load %arg8[%c0_18, %c0_19] : memref<32x128xbf16, #tpu.memory_space<vmem>>, vector<32x128xbf16>
      tpu.vector_store %arg8[%c0_18, %c0_19], %24 {strides = array<i32>} : memref<32x128xbf16, #tpu.memory_space<vmem>>, vector<32x128xbf16>,
    } else {
    }
    return
  }
  func.func @transform_0(%arg0: i32, %arg1: i32, %arg2: i32) -> (i32, i32) {
    %c0_i32 = arith.constant 0 : i32
    return %arg0, %arg2 : i32, i32
  }
  func.func @transform_1(%arg0: i32, %arg1: i32, %arg2: i32) -> (i32, i32) {
    %c0_i32 = arith.constant 0 : i32
    return %arg2, %arg1 : i32, i32
  }
  func.func @transform_2(%arg0: i32, %arg1: i32, %arg2: i32) -> (i32, i32) {
    %c0_i32 = arith.constant 0 : i32
    %c0_i32_0 = arith.constant 0 : i32
    return %arg0, %c0_i32 : i32, i32
  }
  func.func @transform_3(%arg0: i32, %arg1: i32, %arg2: i32) -> (i32, i32) {
    %c0_i32 = arith.constant 0 : i32
    %c0_i32_0 = arith.constant 0 : i32
    return %c0_i32, %arg1 : i32, i32
  }
  func.func @transform_4(%arg0: i32, %arg1: i32, %arg2: i32) -> (i32, i32) {
    %c0_i32 = arith.constant 0 : i32
    %c0_i32_0 = arith.constant 0 : i32
    return %c0_i32, %arg1 : i32, i32
  }
  func.func @transform_5(%arg0: i32, %arg1: i32, %arg2: i32) -> (i32, i32) {
    %c0_i32 = arith.constant 0 : i32
    return %arg0, %arg1 : i32, i32
  }
}

</mosaic_0001>

<bundles_post_ra>
// kernel: _forward_2d.2
= control target key start
LH: loop header
LB: loop body
LE: loop exit
PB: predicated region body
PF: predicated region fallthrough
CT: control target
= control target key end

     0   :  { %vm73_vm0 = vcmask 7168   ;;  %s144_s0 = inlined_call_operand.vmem [shape: f32[32,128], index: 0, kind: input, shape index: {}]   ;;  %s145_s2 = inlined_call_operand.vmem [shape: f32[32,1], index: 2, kind: output, shape index: {1}]   ;;  %s146_s1 = inlined_call_operand.vmem [shape: s8[32,128], index: 1, kind: output, shape index: {0}]  }
   0x1   :  { %v12_v0 = vld [vmem:[%s144_s0 + $0x10] sm:$0xff]  ;;  %v10_v1 = vld [vmem:[%s144_s0] sm:$0xff]  ;;  %v13_v2 = vld [vmem:[%s144_s0 + $0x18] sm:$0xff] }
   0x2   :  { %v16_v3 = vand.u32 2147483647, %v12_v0  ;;  %v14_v4 = vand.u32 2147483647, %v10_v1  ;;  %v11_v5 = vld [vmem:[%s144_s0 + $0x8] sm:$0xff] }
   0x3   :  { %v17_v6 = vand.u32 2147483647, %v13_v2  ;;  %v15_v7 = vand.u32 2147483647, %v11_v5 }
   0x4   :  { %22 = vmax.xlane.f32.xlu1 %v16_v3  ;;  %18 = vmax.xlane.f32.xlu0 %v14_v4 }
   0x8   :  { %24 = vmax.xlane.f32.xlu1 %v17_v6  ;;  %20 = vmax.xlane.f32.xlu0 %v15_v7 }
  0x91   :  { %v23_v8 = vpop.xlane.xlu1 %22  ;;  %v19_v9 = vpop.xlane.xlu0 %18 }
  0x92   :  { %v28_v10 = vmul.f32 0.007874016, %v23_v8  ;;  %v26_v11 = vmul.f32 0.007874016, %v19_v9 }
  0x94   :  { %v32_v12 = vmax.f32 %v28_v10, 1e-12  ;;  %76 = vst.msk [vmem:[%s145_s2 + $0x10] sm:$0xff] %vm73_vm0, %v28_v10  ;;  %v30_v13 = vmax.f32 %v26_v11, 1e-12  ;;  %74 = vst.msk [vmem:[%s145_s2] sm:$0xff] %vm73_vm0, %v26_v11 }
  0x95   :  { %v25_v14 = vpop.xlane.xlu1 %24  ;;  %v21_v15 = vpop.xlane.xlu0 %20 }
  0x96   :  { %90 = vrcp.f32 %v32_v12  ;;  %v29_v16 = vmul.f32 0.007874016, %v25_v14  ;;  %v27_v17 = vmul.f32 0.007874016, %v21_v15 }
  0x97   :  { %92 = vrcp.f32 %v30_v13 }
  0x98   :  { %v33_v18 = vmax.f32 %v29_v16, 1e-12  ;;  %77 = vst.msk [vmem:[%s145_s2 + $0x18] sm:$0xff] %vm73_vm0, %v29_v16  ;;  %v31_v19 = vmax.f32 %v27_v17, 1e-12  ;;  %75 = vst.msk [vmem:[%s145_s2 + $0x8] sm:$0xff] %vm73_vm0, %v27_v17 }
  0x9a   :  { %94 = vrcp.f32 %v33_v18 }
  0x9b   :  { %96 = vrcp.f32 %v31_v19 }
  0xa0   :  { %v91_v20 = vpop.eup %90 }
  0xa1   :  { %v93_v21 = vpop.eup %92  ;;  %v44_v22 = vmul.f32 %v91_v20, %v12_v0 }
  0xa2   :  { %v42_v23 = vmul.f32 %v93_v21, %v10_v1 }
  0xa3   :  { %v88_v24 = vround.rtne.f32 %v44_v22 }
  0xa4   :  { %v95_v25 = vpop.eup %94  ;;  %v86_v26 = vround.rtne.f32 %v42_v23 }
  0xa5   :  { %v97_v27 = vpop.eup %96  ;;  %v52_v28 = vmax.f32 %v88_v24, -128.0  ;;  %v45_v29 = vmul.f32 %v95_v25, %v13_v2 }
  0xa6   :  { %v50_v30 = vmax.f32 %v86_v26, -128.0  ;;  %v43_v31 = vmul.f32 %v97_v27, %v11_v5 }
  0xa7   :  { %v89_v32 = vround.rtne.f32 %v45_v29  ;;  %v56_v34 = vmin.f32 %v52_v28, 127.0 }
  0xa8   :  { %v87_v33 = vround.rtne.f32 %v43_v31  ;;  %v54_v36 = vmin.f32 %v50_v30, 127.0 }
  0xa9   :  { %v53_v35 = vmax.f32 %v89_v32, -128.0  ;;  %v60_v40 = vtrunc.f32 %v56_v34 }
  0xaa   :  { %v51_v37 = vmax.f32 %v87_v33, -128.0  ;;  %v58_v42 = vtrunc.f32 %v54_v36 }
  0xab   :  { %v57_v38 = vmin.f32 %v53_v35, 127.0 }
  0xac   :  { %v55_v39 = vmin.f32 %v51_v37, 127.0 }
  0xad   :  { %v61_v41 = vtrunc.f32 %v57_v38 }
  0xae   :  { %v59_v43 = vtrunc.f32 %v55_v39 }
  0xaf   :  { %v66_v44 = vpack.c.f32.eXmY %v60_v40, %v61_v41, 312 }
  0xb0   :  { %v62_v45 = vpack.c.f32.eXmY %v58_v42, %v59_v43, 312 }
  0xb2   :  { %v70_v46 = vpack.c.b8 %v66_v44, %v62_v45 }
  0xb4   :  { %72 = vst [vmem:[%s146_s1] sm:$0xff] %v70_v46 }

// kernel: _forward_2d.3
= control target key start
LH: loop header
LB: loop body
LE: loop exit
PB: predicated region body
PF: predicated region fallthrough
CT: control target
= control target key end

     0   :  { %v240_v1 = vmov 0   ;;  %s310_s1 = inlined_call_operand.vmem [shape: s8[128,128], index: 1, kind: input, shape index: {}]   ;;  %s311_s0 = inlined_call_operand.vmem [shape: s8[32,128], index: 0, kind: input, shape index: {}]   ;;  %s312_s2 = inlined_call_operand.vmem [shape: f32[32,1], index: 2, kind: input, shape index: {}]   ;;  %s313_s3 = inlined_call_operand.vmem [shape: f32[1,128], index: 3, kind: input, shape index: {}]   ;;  %s314_s4 = inlined_call_operand.vmem [shape: f32[1,128], index: 4, kind: input, shape index: {}]   ;;  %s315_s5 = inlined_call_operand.vmem [shape: bf16[32,128], index: 5, kind: output, shape index: {}]  }
   0x1   :  { %v36_v0 = vld [vmem:[%s310_s1] sm:$0xff]  ;;  %239 = vset.pattern.permute.xlu1 %v240_v1  ;;  %238 = vset.pattern.permute.xlu0 %v240_v1  ;;  %v114_v5 = vld [vmem:[%s312_s2 + $0x10] sm:$0xff]  ;;  %v37_v6 = vld [vmem:[%s310_s1 + $0x8] sm:$0xff] }
   0x2   :  { %v40_v2 = vunpack.c.l.s8.bf16 %v36_v0  ;;  %v41_v3 = vunpack.c.h.s8.bf16 %v36_v0  ;;  %v33_v4 = vld [vmem:[%s311_s0] sm:$0xff]  ;;  %128 = vperm.xlu1 %239, %v114_v5   ;;  %v115_v9 = vld [vmem:[%s312_s2 + $0x18] sm:$0xff]  ;;  %v113_v10 = vld [vmem:[%s312_s2 + $0x8] sm:$0xff]  ;;  %v42_v11 = vunpack.c.l.s8.bf16 %v37_v6  ;;  %v43_v12 = vunpack.c.h.s8.bf16 %v37_v6 }
   0x3   :  { %v112_v7 = vld [vmem:[%s312_s2] sm:$0xff]  ;;  %v34_v8 = vunpack.c.l.s8.bf16 %v33_v4  ;;  %v38_v13 = vld [vmem:[%s310_s1 + $0x10] sm:$0xff]  ;;  %v39_v16 = vld [vmem:[%s310_s1 + $0x18] sm:$0xff]  ;;  %v35_v19 = vunpack.c.h.s8.bf16 %v33_v4 }
   0x4   :  { %217 = vmatprep.subr.bf16.mxu0 %v40_v2  ;;  %118 = vperm.xlu0 %238, %v112_v7   ;;  %v44_v14 = vunpack.c.l.s8.bf16 %v38_v13  ;;  %v45_v15 = vunpack.c.h.s8.bf16 %v38_v13  ;;  %v46_v17 = vunpack.c.l.s8.bf16 %v39_v16  ;;  %v47_v18 = vunpack.c.h.s8.bf16 %v39_v16  ;;  %v186_v23 = vld [vmem:[%s313_s3] ss:$0 sm:$0xff] }
   0x5   :  { %218 = vmatpush3.bf16.msra.mxu0 %v40_v2  ;;  %233 = vmatprep.mubr.bf16.mxu0 %v34_v8  ;;  %v187_v33 = vld [vmem:[%s314_s4] ss:$0 sm:$0xff] }
   0x6   :  { %219 = vmatprep.subr.bf16.mxu0 %v41_v3  ;;  %133 = vperm.xlu1 %239, %v115_v9  }
   0x8   :  { %123 = vperm.xlu0 %238, %v113_v10  }
   0x9   :  { %220 = vmatpush3.bf16.msra.mxu0 %v41_v3 }
   0xa   :  { %221 = vmatprep.subr.bf16.mxu0 %v42_v11 }
   0xd   :  { %222 = vmatpush3.bf16.msra.mxu0 %v42_v11 }
   0xe   :  { %223 = vmatprep.subr.bf16.mxu0 %v43_v12 }
  0x11   :  { %224 = vmatpush3.bf16.msra.mxu0 %v43_v12 }
  0x12   :  { %225 = vmatprep.subr.bf16.mxu0 %v44_v14 }
  0x15   :  { %226 = vmatpush3.bf16.msra.mxu0 %v44_v14 }
  0x16   :  { %227 = vmatprep.subr.bf16.mxu0 %v45_v15 }
  0x19   :  { %228 = vmatpush3.bf16.msra.mxu0 %v45_v15 }
  0x1a   :  { %229 = vmatprep.subr.bf16.mxu0 %v46_v17 }
  0x1d   :  { %230 = vmatpush3.bf16.msra.mxu0 %v46_v17 }
  0x1e   :  { %231 = vmatprep.subr.bf16.mxu0 %v47_v18 }
  0x21   :  { %232 = vmatpush3.bf16.msra.mxu0 %v47_v18 }
  0x24   :  { %234 = vmatmul.mubr.bf16.vlgmr.msra.gmra.mrb[0].mxu0 %v35_v19 }
  0x81   :  { %v129_v20 = vpop.permute.xlu1 %128 }
  0x83   :  { %v119_v21 = vpop.permute.xlu0 %118 }
  0x85   :  { %v134_v26 = vpop.permute.xlu1 %133 }
  0x87   :  { %v124_v29 = vpop.permute.xlu0 %123 }
  0xf7   :  { %v235_v22 = vpop.f32.mrb[0].mxu0 }
  0xf8   :  { %v138_v24 = vmul.f32 %v235_v22, %v129_v20  ;;  %v82_v25 = vpop.f32.mrb[1].mxu0 }
  0xf9   :  { %v136_v27 = vmul.f32 %v119_v21, %v82_v25  ;;  %v236_v28 = vpop.f32.mrb[2].mxu0 }
  0xfa   :  { %v149_v30 = vmul.f32 %v186_v23, %v138_v24  ;;  %v139_v31 = vmul.f32 %v236_v28, %v134_v26  ;;  %v85_v32 = vpop.f32.mrb[3].mxu0 }
  0xfb   :  { %v147_v34 = vmul.f32 %v186_v23, %v136_v27  ;;  %v137_v35 = vmul.f32 %v124_v29, %v85_v32 }
  0xfc   :  { %v150_v36 = vmul.f32 %v186_v23, %v139_v31  ;;  %v160_v38 = vadd.f32 %v187_v33, %v149_v30 }
  0xfd   :  { %v148_v37 = vmul.f32 %v186_v23, %v137_v35  ;;  %v158_v40 = vadd.f32 %v187_v33, %v147_v34 }
  0xfe   :  { %v161_v39 = vadd.f32 %v187_v33, %v150_v36 }
  0xff   :  { %v159_v41 = vadd.f32 %v187_v33, %v148_v37 }
 0x100   :  { %v204_v42 = vpack.c.bf16 %v161_v39, %v160_v38 }
 0x101   :  { %v199_v43 = vpack.c.bf16 %v159_v41, %v158_v40 }
 0x102   :  { %206 = vst [vmem:[%s315_s5 + $0x8] sm:$0xff] %v204_v42  }
 0x103   :  { %200 = vst [vmem:[%s315_s5] sm:$0xff] %v199_v43  }

</bundles_post_ra>
